<compile_context>
chip_gen: v7x
topology: tpu7x:2x2x1
jax: 0.10.0
libtpu: 0.0.40
codegen_flags: <defaults>
</compile_context>

<pallas_src>
import functools

import jax
import jax.numpy as jnp
from jax.experimental import pallas as pl
from jax.experimental.pallas import tpu as pltpu


def pool_linear_kernel(x_ref, w_ref, b_ref, o_ref, acc_ref, *, inv_hw):
    """Fused global-average-pool + Linear, streaming over HW chunks.

    x_ref:   (TB, C, HW_CHUNK) feature-map chunk (NCHW collapsed, source dtype)
    w_ref:   (C, T)            dense_out weight (transposed from torch (T, C))
    b_ref:   (1, T)            dense_out bias
    o_ref:   (TB, T)           regression outputs
    acc_ref: (TB, C) f32       running spatial sum (persists across HW chunks)
    """
    hw_id = pl.program_id(1)

    @pl.when(hw_id == 0)
    def _():
        acc_ref[...] = jnp.zeros_like(acc_ref)

    # Load in source dtype (bf16 stays bf16 in VMEM/HBM traffic); accumulate
    # the spatial sum in f32.  The 1/HW scale is folded into the small (TB, C)
    # pooled tensor, not applied to the big tile.
    x = x_ref[...]
    acc_ref[...] += jnp.sum(x, axis=-1, dtype=jnp.float32)       # (TB, C)

    @pl.when(hw_id == pl.num_programs(1) - 1)
    def _():
        feat = acc_ref[...] * inv_hw                             # (TB, C) f32
        out = jnp.dot(feat, w_ref[...].astype(jnp.float32),
                      preferred_element_type=jnp.float32)        # (TB, T)
        o_ref[...] = (out + b_ref[...].astype(jnp.float32)).astype(o_ref.dtype)


def _pick_hw_chunk(HW, max_chunk=2048):
    """Spatial chunk length: must be a multiple of 128 that divides HW exactly
    (block padding would corrupt the spatial sum); otherwise stream the full
    extent in a single chunk."""
    if HW <= max_chunk or HW % 128 != 0:
        return HW
    for c in range(min(max_chunk, HW), 127, -128):
        if HW % c == 0:
            return c
    return HW


def _pick_tb(B, C, hw_chunk, itemsize, budget_bytes=8 * 1024 * 1024):
    """Batch tile: multiple of 8 (or full B when tiny), sized so the
    double-buffered input block stays well under the v7x VMEM budget
    (~8 MiB/block -> ~16 MiB buffered), and small enough that the batch grid
    has >= 2 steps so both v7x TensorCores get work."""
    if B <= 8:
        return B
    row_bytes = max(C * hw_chunk * itemsize, 1)
    max_tb = max(8, (budget_bytes // row_bytes) // 8 * 8)
    tb = min(max_tb, (B // 8) * 8)
    if B >= 16:
        tb = min(tb, max(8, ((B // 2) // 8) * 8))
    return max(8, tb)


def base_model_head(feat_nchw, weight, bias):
    """feat_nchw: (B, C, H, W) backbone features (NCHW, like PyTorch).
       weight:    (T, C) torch nn.Linear weight
       bias:      (T,)   torch nn.Linear bias
       returns:   (B, T)
    """
    B, C, H, W = feat_nchw.shape
    T = weight.shape[0]
    HW = H * W

    # Free reshape (contiguous view, no extra HBM pass): (B,C,H,W) -> (B,C,HW).
    x = feat_nchw.reshape(B, C, HW)
    w = jnp.transpose(weight, (1, 0))        # (C, T) -- tiny
    b = bias.reshape(1, T)

    itemsize = jnp.dtype(x.dtype).itemsize
    hw_chunk = _pick_hw_chunk(HW)
    tb = _pick_tb(B, C, hw_chunk, itemsize)
    n_b = pl.cdiv(B, tb)
    n_hw = HW // hw_chunk

    # NOTE: T=num_targets is tiny here; if it ever widens, zero-pad w to
    # (C, 128*k) in this wrapper and slice the output, so stores are lane-dense.
    kernel = functools.partial(pool_linear_kernel, inv_hw=1.0 / HW)

    out = pl.pallas_call(
        kernel,
        out_shape=jax.ShapeDtypeStruct((B, T), jnp.float32),
        grid_spec=pltpu.PrefetchScalarGridSpec(
            num_scalar_prefetch=0,
            grid=(n_b, n_hw),
            in_specs=[
                pl.BlockSpec((tb, C, hw_chunk), lambda i, j: (i, 0, j)),
                pl.BlockSpec((C, T), lambda i, j: (0, 0)),
                pl.BlockSpec((1, T), lambda i, j: (0, 0)),
            ],
            out_specs=pl.BlockSpec((tb, T), lambda i, j: (i, 0)),
            scratch_shapes=[pltpu.VMEM((tb, C), jnp.float32)],
        ),
        compiler_params=pltpu.CompilerParams(
            dimension_semantics=("parallel", "arbitrary"),
            vmem_limit_bytes=64 * 1024 * 1024,
        ),
    )(x, w, b)
    return out


if __name__ == "__main__":
    # Small shapes consistent with the forward pass:
    #   backbone feature map (B, C, H, W), num_targets T.
    B, C, H, W = 2, 128, 8, 8
    T = 8

    key = jax.random.PRNGKey(0)
    k_feat, k_w, k_b = jax.random.split(key, 3)

    feat = jax.random.normal(k_feat, (B, C, H, W), dtype=jnp.float32)
    # Deterministic synthetic dense_out params (torch layout: weight (T,C), bias (T,))
    weight = jax.random.normal(k_w, (T, C), dtype=jnp.float32) * 0.02
    bias = jax.random.normal(k_b, (T,), dtype=jnp.float32) * 0.01

    out = base_model_head(feat, weight, bias)
    out = jax.block_until_ready(out)

    # Pure-JAX reference of the same math (pool + linear) for a sanity check.
    ref_feat = jnp.mean(feat, axis=(2, 3))                # (B, C)
    ref = ref_feat @ weight.T + bias                      # (B, T)
    assert out.shape == (B, T)
    assert jnp.allclose(out, ref, atol=1e-4, rtol=1e-4), "mismatch vs reference"

    print("KERNEL_OK")
</pallas_src>

<mosaic_0001>
module attributes {stable_mosaic.version = 11 : i64} {
  func.func @pool_linear_kernel(%arg0: i32, %arg1: i32, %arg2: memref<2x128x64xf32, #tpu.memory_space<vmem>>, %arg3: memref<128x8xf32, #tpu.memory_space<vmem>>, %arg4: memref<1x8xf32, #tpu.memory_space<vmem>>, %arg5: memref<2x8xf32, #tpu.memory_space<vmem>>, %arg6: memref<2x128xf32, #tpu.memory_space<vmem>>) attributes {dimension_semantics = [#tpu.dimension_semantics<parallel>, #tpu.dimension_semantics<arbitrary>], iteration_bounds = array<i64: 1, 1>, scalar_prefetch = 0 : i64, scratch_operands = 1 : i64, tpu.core_type = #tpu.core_type<tc>, window_params = [{transform_indices = @transform_0, window_bounds = array<i64: 2, 128, 64>}, {pipeline_mode = #tpu.pipeline_mode<synchronous>, transform_indices = @transform_1, window_bounds = array<i64: 128, 8>}, {pipeline_mode = #tpu.pipeline_mode<synchronous>, transform_indices = @transform_2, window_bounds = array<i64: 1, 8>}, {transform_indices = @transform_3, window_bounds = array<i64: 2, 8>}]} {
    %c0_i32 = arith.constant 0 : i32
    %0 = arith.cmpi eq, %arg1, %c0_i32 : i32
    %1 = arith.extui %0 : i1 to i32
    %c0_i32_0 = arith.constant 0 : i32
    %2 = arith.cmpi ne, %1, %c0_i32_0 : i32
    scf.if %2 {
      %cst_9 = arith.constant 0.000000e+00 : f32
      %11 = vector.broadcast %cst_9 : f32 to vector<2x128xf32>
      %c0_10 = arith.constant 0 : index
      %c0_11 = arith.constant 0 : index
      %12 = vector.load %arg6[%c0_10, %c0_11] : memref<2x128xf32, #tpu.memory_space<vmem>>, vector<2x128xf32>
      tpu.vector_store %arg6[%c0_10, %c0_11], %11 {strides = array<i32>} : memref<2x128xf32, #tpu.memory_space<vmem>>, vector<2x128xf32>,
    } else {
    }
    %c0 = arith.constant 0 : index
    %c0_1 = arith.constant 0 : index
    %c0_2 = arith.constant 0 : index
    %3 = vector.load %arg2[%c0, %c0_1, %c0_2] : memref<2x128x64xf32, #tpu.memory_space<vmem>>, vector<2x128x64xf32>
    %c0_3 = arith.constant 0 : index
    %c0_4 = arith.constant 0 : index
    %4 = vector.load %arg6[%c0_3, %c0_4] : memref<2x128xf32, #tpu.memory_space<vmem>>, vector<2x128xf32>
    %cst = arith.constant dense<0.000000e+00> : vector<2x128xf32>
    %5 = vector.multi_reduction <add>, %3, %cst [2] : vector<2x128x64xf32> to vector<2x128xf32>
    %6 = arith.addf %4, %5 : vector<2x128xf32>
    %c0_5 = arith.constant 0 : index
    %c0_6 = arith.constant 0 : index
    %7 = vector.load %arg6[%c0_5, %c0_6] : memref<2x128xf32, #tpu.memory_space<vmem>>, vector<2x128xf32>
    tpu.vector_store %arg6[%c0_5, %c0_6], %6 {strides = array<i32>} : memref<2x128xf32, #tpu.memory_space<vmem>>, vector<2x128xf32>,
    %c0_i32_7 = arith.constant 0 : i32
    %8 = arith.cmpi eq, %arg1, %c0_i32_7 : i32
    %9 = arith.extui %8 : i1 to i32
    %c0_i32_8 = arith.constant 0 : i32
    %10 = arith.cmpi ne, %9, %c0_i32_8 : i32
    scf.if %10 {
      %c0_9 = arith.constant 0 : index
      %c0_10 = arith.constant 0 : index
      %11 = vector.load %arg6[%c0_9, %c0_10] : memref<2x128xf32, #tpu.memory_space<vmem>>, vector<2x128xf32>
      %cst_11 = arith.constant 1.562500e-02 : f32
      %12 = vector.broadcast %cst_11 : f32 to vector<2x128xf32>
      %13 = arith.mulf %11, %12 : vector<2x128xf32>
      %c0_12 = arith.constant 0 : index
      %c0_13 = arith.constant 0 : index
      %14 = vector.load %arg3[%c0_12, %c0_13] : memref<128x8xf32, #tpu.memory_space<vmem>>, vector<128x8xf32>
      %cst_14 = arith.constant dense<0.000000e+00> : vector<2x8xf32>
      %15 = tpu.matmul %13, %14, %cst_14 {dimension_numbers = #tpu.dot_dimension_numbers<[1], [0], [0], [1], [0, 0, 1, 1], [], []>} : vector<2x128xf32>, vector<128x8xf32>, vector<2x8xf32> -> vector<2x8xf32>
      %c0_15 = arith.constant 0 : index
      %c0_16 = arith.constant 0 : index
      %16 = vector.load %arg4[%c0_15, %c0_16] : memref<1x8xf32, #tpu.memory_space<vmem>>, vector<1x8xf32>
      %17 = vector.broadcast %16 : vector<1x8xf32> to vector<2x8xf32>
      %18 = arith.addf %15, %17 : vector<2x8xf32>
      %c0_17 = arith.constant 0 : index
      %c0_18 = arith.constant 0 : index
      %19 = vector.load %arg5[%c0_17, %c0_18] : memref<2x8xf32, #tpu.memory_space<vmem>>, vector<2x8xf32>
      tpu.vector_store %arg5[%c0_17, %c0_18], %18 {strides = array<i32>} : memref<2x8xf32, #tpu.memory_space<vmem>>, vector<2x8xf32>,
    } else {
    }
    return
  }
  func.func @transform_0(%arg0: i32, %arg1: i32) -> (i32, i32, i32) {
    %c0_i32 = arith.constant 0 : i32
    %c0_i32_0 = arith.constant 0 : i32
    return %arg0, %c0_i32, %arg1 : i32, i32, i32
  }
  func.func @transform_1(%arg0: i32, %arg1: i32) -> (i32, i32) {
    %c0_i32 = arith.constant 0 : i32
    %c0_i32_0 = arith.constant 0 : i32
    %c0_i32_1 = arith.constant 0 : i32
    return %c0_i32, %c0_i32_0 : i32, i32
  }
  func.func @transform_2(%arg0: i32, %arg1: i32) -> (i32, i32) {
    %c0_i32 = arith.constant 0 : i32
    %c0_i32_0 = arith.constant 0 : i32
    %c0_i32_1 = arith.constant 0 : i32
    return %c0_i32, %c0_i32_0 : i32, i32
  }
  func.func @transform_3(%arg0: i32, %arg1: i32) -> (i32, i32) {
    %c0_i32 = arith.constant 0 : i32
    %c0_i32_0 = arith.constant 0 : i32
    return %arg0, %c0_i32 : i32, i32
  }
}

</mosaic_0001>

<bundles_post_ra>
// kernel: tpu_custom_call.1
= control target key start
LH: loop header
LB: loop body
LE: loop exit
PB: predicated region body
PF: predicated region fallthrough
CT: control target
= control target key end

     0   :  { %8 = vsyncpa [#allocation4], 0  ;;  %s958_s0 = inlined_call_operand.hbm [shape: f32[2,128,64], index: 0, kind: input, shape index: {}]   ;;  %s959_s1 = inlined_call_operand.hbm [shape: f32[128,8], index: 1, kind: input, shape index: {}]   ;;  %s960_s2 = inlined_call_operand.hbm [shape: f32[1,8], index: 2, kind: input, shape index: {}]   ;;  %s961_s3 = inlined_call_operand.hbm [shape: f32[2,8], index: 3, kind: output, shape index: {}]  }
   0x1   :  { %9 = vsyncpa [#allocation7], 0 }
   0x2   :  { %10 = vsyncpa [#allocation5], 0  ;;  %s712_s12 = smov [#allocation6]   ;;  %s713_s14 = smov [#allocation3]  }
   0x3   :  { %s28_s13 = sshll.u32 %s712_s12, 4  ;;  %s16_s15 = sshll.u32 %s713_s14, 4  ;;  %s29_s13 = int_to_ptr.vmem [resolvable:$true] %s28_s13  ;;  %s741_s15 = int_to_ptr.vmem [resolvable:$true] %s16_s15 }
   0x4   :  { %s618_s18 = scalar_lea.hbm %s959_s1, 2048 }
   0x5   :  { %p619_p0 = scmp.ne.s32.totalorder %s959_s1, %s618_s18  ;;  %p622_p1 = scmp.lt.u32.totalorder %s618_s18, %s959_s1 }
   0x7   :  { %p624_p2 = pnand %p622_p1, %p619_p0 }
   0x9   :  { %627 = shalt.err (!%p624_p2)
}
   0xa   :  { %s628_s23 = scalar_lea.vmem %s29_s13, 2048  ;;  %p633_p4 = scmp.lt.s32.totalorder %s29_s13, %s29_s13 }
   0xb   :  { %p629_p3 = scmp.ne.s32.totalorder %s29_s13, %s628_s23  ;;  %p634_p5 = scmp.lt.s32.totalorder %s628_s23, %s628_s23 }
   0xd   :  { %p635_p6 = por %p634_p5, %p633_p4 }
   0xf   :  { %p636_p7 = pnand %p635_p6, %p629_p3 }
  0x11   :  { %639 = shalt.err (!%p636_p7)
}
  0x12   :  { %s714_s24 = smov 128   ;;  %s715_s25 = smov 8  }
  0x13   :  { %34 = dma.hbm_to_vmem [thread:$0]  %s959_s1, 2048, %s29_s13, [#allocation7], %s714_s24, %s714_s24, %s715_s25  }
  0x14   :  { %s640_s30 = scalar_lea.hbm %s958_s0, 4096 }
  0x15   :  { %p641_p8 = scmp.ne.s32.totalorder %s958_s0, %s640_s30  ;;  %p644_p9 = scmp.lt.u32.totalorder %s640_s30, %s958_s0 }
  0x17   :  { %p646_p10 = pnand %p644_p9, %p641_p8 }
  0x19   :  { %649 = shalt.err (!%p646_p10)
}
  0x1a   :  { %s650_s8 = scalar_lea.vmem %s741_s15, 4096  ;;  %p655_p12 = scmp.lt.s32.totalorder %s741_s15, %s741_s15 }
  0x1b   :  { %p651_p11 = scmp.ne.s32.totalorder %s741_s15, %s650_s8  ;;  %p656_p13 = scmp.lt.s32.totalorder %s650_s8, %s650_s8 }
  0x1d   :  { %p657_p0 = por %p656_p13, %p655_p12 }
  0x1f   :  { %p658_p1 = pnand %p657_p0, %p651_p11 }
  0x21   :  { %661 = shalt.err (!%p658_p1)
}
  0x22   :  { %22 = dma.hbm_to_vmem [thread:$0]  %s958_s0, 4096, %s741_s15, [#allocation4], %s714_s24, %s714_s24, %s715_s25  }
  0x23   :  { %s716_s10 = smov [#allocation8]   ;;  %s662_s14 = scalar_lea.hbm %s960_s2, 16 }
  0x24   :  { %s41_s11 = sshll.u32 %s716_s10, 4  ;;  %p663_p2 = scmp.ne.s32.totalorder %s960_s2, %s662_s14  ;;  %s42_s11 = int_to_ptr.vmem [resolvable:$true] %s41_s11 }
  0x25   :  { %p666_p3 = scmp.lt.u32.totalorder %s662_s14, %s960_s2 }
  0x27   :  { %p668_p4 = pnand %p666_p3, %p663_p2 }
  0x29   :  { %671 = shalt.err (!%p668_p4)
}
  0x2a   :  { %s672_s20 = scalar_lea.vmem %s42_s11, 16  ;;  %s676_s0 = scalar_lea.vmem %s42_s11, 32 }
  0x2b   :  { %p673_p5 = scmp.ne.s32.totalorder %s42_s11, %s672_s20  ;;  %p677_p6 = scmp.lt.s32.totalorder %s42_s11, %s42_s11 }
  0x2c   :  { %p678_p7 = scmp.lt.s32.totalorder %s676_s0, %s672_s20 }
  0x2e   :  { %p679_p8 = por %p678_p7, %p677_p6 }
  0x30   :  { %p680_p9 = pnand %p679_p8, %p673_p5 }
  0x32   :  { %683 = shalt.err (!%p680_p9)
}
  0x33   :  { %44 = dma.hbm_to_vmem [thread:$0]  %s960_s2, 16, %s42_s11, [#allocation7]  }
  0x34   :  { %706 = dma.done.wait [#allocation4], 4096  }
  0x35   :  { %707 = vsyncadd [#allocation4], 4294963200 }
  0x36   :  { %708 = dma.done.wait [#allocation7], 2064  }
  0x37   :  { %709 = vsyncadd [#allocation7], 4294965232  ;;  %vm92_vm0 = vcmask 523264   ;;  %v75_v0 = vld [vmem:[#allocation3 + $0x80] sm:$0xff]  ;;  %v76_v2 = vld [vmem:[#allocation3 + $0x88] sm:$0xff]  ;;  %vm719_vm1 = vmmov 0  }
  0x38   :  { %v59_v1 = vld [vmem:[#allocation3] sm:$0xff]  ;;  %v141_v3 = vsel %vm92_vm0, %v75_v0, 0.0  ;;  %v60_v5 = vld [vmem:[#allocation3 + $0x8] sm:$0xff]  ;;  %v144_v6 = vsel %vm92_vm0, %v76_v2, 0.0  ;;  %v77_v8 = vld [vmem:[#allocation3 + $0x90] sm:$0xff]  ;;  %vm232_vm2 = vcmask 130112  }
  0x39   :  { %v93_v4 = vsel %vm92_vm0, %v59_v1, 0.0  ;;  %142 = vadd.xlane.f32.xlu1 %v141_v3  ;;  %v96_v7 = vsel %vm92_vm0, %v60_v5, 0.0  ;;  %v61_v9 = vld [vmem:[#allocation3 + $0x10] sm:$0xff]  ;;  %v147_v10 = vsel %vm92_vm0, %v77_v8, 0.0  ;;  %v78_v12 = vld [vmem:[#allocation3 + $0x98] sm:$0xff]  ;;  %v79_v16 = vld [vmem:[#allocation3 + $0xa0] sm:$0xff] }
  0x3a   :  { %94 = vadd.xlane.f32.xlu0 %v93_v4  ;;  %v99_v11 = vsel %vm92_vm0, %v61_v9, 0.0  ;;  %v62_v13 = vld [vmem:[#allocation3 + $0x18] sm:$0xff]  ;;  %v150_v14 = vsel %vm92_vm0, %v78_v12, 0.0  ;;  %v63_v17 = vld [vmem:[#allocation3 + $0x20] sm:$0xff]  ;;  %v153_v18 = vsel %vm92_vm0, %v79_v16, 0.0  ;;  %v80_v20 = vld [vmem:[#allocation3 + $0xa8] sm:$0xff] }
  0x3b   :  { %v102_v15 = vsel %vm92_vm0, %v62_v13, 0.0  ;;  %v105_v19 = vsel %vm92_vm0, %v63_v17, 0.0  ;;  %v64_v21 = vld [vmem:[#allocation3 + $0x28] sm:$0xff]  ;;  %v156_v22 = vsel %vm92_vm0, %v80_v20, 0.0  ;;  %v81_v24 = vld [vmem:[#allocation3 + $0xb0] sm:$0xff]  ;;  %v82_v28 = vld [vmem:[#allocation3 + $0xb8] sm:$0xff] }
  0x3c   :  { %v108_v23 = vsel %vm92_vm0, %v64_v21, 0.0  ;;  %v65_v25 = vld [vmem:[#allocation3 + $0x30] sm:$0xff]  ;;  %v159_v26 = vsel %vm92_vm0, %v81_v24, 0.0  ;;  %v66_v29 = vld [vmem:[#allocation3 + $0x38] sm:$0xff]  ;;  %v162_v30 = vsel %vm92_vm0, %v82_v28, 0.0  ;;  %v83_v32 = vld [vmem:[#allocation3 + $0xc0] sm:$0xff] }
  0x3d   :  { %145 = vadd.xlane.f32.xlu1 %v144_v6  ;;  %v111_v27 = vsel %vm92_vm0, %v65_v25, 0.0  ;;  %v114_v31 = vsel %vm92_vm0, %v66_v29, 0.0  ;;  %v67_v33 = vld [vmem:[#allocation3 + $0x40] sm:$0xff]  ;;  %v165_v34 = vsel %vm92_vm0, %v83_v32, 0.0  ;;  %v84_v36 = vld [vmem:[#allocation3 + $0xc8] sm:$0xff]  ;;  %v85_v40 = vld [vmem:[#allocation3 + $0xd0] sm:$0xff] }
  0x3e   :  { %97 = vadd.xlane.f32.xlu0 %v96_v7  ;;  %v117_v35 = vsel %vm92_vm0, %v67_v33, 0.0  ;;  %v68_v37 = vld [vmem:[#allocation3 + $0x48] sm:$0xff]  ;;  %v168_v38 = vsel %vm92_vm0, %v84_v36, 0.0  ;;  %v69_v41 = vld [vmem:[#allocation3 + $0x50] sm:$0xff]  ;;  %v171_v42 = vsel %vm92_vm0, %v85_v40, 0.0  ;;  %v86_v44 = vld [vmem:[#allocation3 + $0xd8] sm:$0xff] }
  0x3f   :  { %v120_v39 = vsel %vm92_vm0, %v68_v37, 0.0  ;;  %v123_v43 = vsel %vm92_vm0, %v69_v41, 0.0  ;;  %v70_v45 = vld [vmem:[#allocation3 + $0x58] sm:$0xff]  ;;  %v174_v46 = vsel %vm92_vm0, %v86_v44, 0.0  ;;  %v87_v48 = vld [vmem:[#allocation3 + $0xe0] sm:$0xff]  ;;  %v88_v52 = vld [vmem:[#allocation3 + $0xe8] sm:$0xff] }
  0x40   :  { %v126_v47 = vsel %vm92_vm0, %v70_v45, 0.0  ;;  %v71_v49 = vld [vmem:[#allocation3 + $0x60] sm:$0xff]  ;;  %v177_v50 = vsel %vm92_vm0, %v87_v48, 0.0  ;;  %v72_v53 = vld [vmem:[#allocation3 + $0x68] sm:$0xff]  ;;  %v180_v54 = vsel %vm92_vm0, %v88_v52, 0.0  ;;  %v89_v56 = vld [vmem:[#allocation3 + $0xf0] sm:$0xff] }
  0x41   :  { %148 = vadd.xlane.f32.xlu1 %v147_v10  ;;  %v129_v51 = vsel %vm92_vm0, %v71_v49, 0.0  ;;  %v132_v55 = vsel %vm92_vm0, %v72_v53, 0.0  ;;  %v73_v57 = vld [vmem:[#allocation3 + $0x70] sm:$0xff]  ;;  %v183_v58 = vsel %vm92_vm0, %v89_v56, 0.0  ;;  %v90_v60 = vld [vmem:[#allocation3 + $0xf8] sm:$0xff]  ;;  %v421_v62 = vld [vmem:[#allocation6] sm:$0xff] }
  0x42   :  { %100 = vadd.xlane.f32.xlu0 %v99_v11  ;;  %v135_v59 = vsel %vm92_vm0, %v73_v57, 0.0  ;;  %v74_v61 = vld [vmem:[#allocation3 + $0x78] sm:$0xff]  ;;  %v422_v63 = vld [vmem:[#allocation6 + $0x8] sm:$0xff]  ;;  %v186_v0 = vsel %vm92_vm0, %v90_v60, 0.0  ;;  %v717_v3 = vmov 0.0|0.0   ;;  %v423_v4 = vld [vmem:[#allocation6 + $0x10] sm:$0xff] }
  0x43   :  { %v138_v1 = vsel %vm92_vm0, %v74_v61, 0.0  ;;  %v586_v2 = vpack.c.bf16 %v422_v63, %v421_v62  ;;  %585 = vmatprep.subr.bf16.mxu0 %v717_v3  ;;  %v424_v5 = vld [vmem:[#allocation6 + $0x18] sm:$0xff]  ;;  %v425_v7 = vld [vmem:[#allocation6 + $0x20] sm:$0xff]  ;;  %v426_v8 = vld [vmem:[#allocation6 + $0x28] sm:$0xff]  ;;  %v718_v13 = vmov 0.0   ;;  %vm239_vm3 = vcmask 195712  }
  0x44   :  { %v589_v6 = vpack.c.bf16 %v424_v5, %v423_v4  ;;  %v592_v9 = vpack.c.bf16 %v426_v8, %v425_v7  ;;  %v427_v10 = vld [vmem:[#allocation6 + $0x30] sm:$0xff]  ;;  %v428_v11 = vld [vmem:[#allocation6 + $0x38] sm:$0xff]  ;;  %58 = vst [vmem:[#allocation2] sm:$0x3] %v718_v13  ;;  %v433_v20 = vld [vmem:[#allocation6 + $0x60] sm:$0xff]  ;;  %582 = vmatprep.mubr.msk.f32.mxu0 %vm719_vm1, %v718_v13  ;;  %vm246_vm4 = vcmask 261312  }
  0x45   :  { %151 = vadd.xlane.f32.xlu1 %v150_v14  ;;  %587 = vmatpush3.bf16.msra.mxu0 %v586_v2  ;;  %v595_v12 = vpack.c.bf16 %v428_v11, %v427_v10  ;;  %v429_v14 = vld [vmem:[#allocation6 + $0x40] sm:$0xff]  ;;  %v431_v17 = vld [vmem:[#allocation6 + $0x50] sm:$0xff]  ;;  %v434_v21 = vld [vmem:[#allocation6 + $0x68] sm:$0xff]  ;;  %vm253_vm5 = vcmask 326912   ;;  %vm260_vm6 = vcmask 392512   ;;  %vm267_vm7 = vcmask 458112  }
  0x46   :  { %103 = vadd.xlane.f32.xlu0 %v102_v15  ;;  %588 = vmatprep.subr.bf16.mxu0 %v717_v3  ;;  %v430_v15 = vld [vmem:[#allocation6 + $0x48] sm:$0xff]  ;;  %v436_v24 = vld [vmem:[#allocation6 + $0x78] sm:$0xff]  ;;  %vm274_vm8 = vcmask 523712   ;;  %vm281_vm9 = vcmask 589312   ;;  %vm288_vm10 = vcmask 654912   ;;  %vm295_vm11 = vcmask 720512  }
  0x47   :  { %v598_v16 = vpack.c.bf16 %v430_v15, %v429_v14  ;;  %vm302_vm12 = vcmask 786112   ;;  %vm309_vm13 = vcmask 851712   ;;  %vm316_vm14 = vcmask 917312   ;;  %s720_s2 = smov [#allocation9]  }
  0x48   :  { %vm323_vm15 = vcmask 982912   ;;  %vm330_vm0 = vcmask 1048512   ;;  %vm411_vm1 = vcmask 1041409   ;;  %s522_s22 = sshll.u32 %s720_s2, 4  ;;  %s523_s22 = int_to_ptr.vmem [resolvable:$true] %s522_s22 }
  0x49   :  { %154 = vadd.xlane.f32.xlu1 %v153_v18  ;;  %590 = vmatpush3.bf16.msra.mxu0 %v589_v6  ;;  %v432_v18 = vld [vmem:[#allocation6 + $0x58] sm:$0xff]  ;;  %s684_s23 = scalar_lea.vmem %s523_s22, 32  ;;  %p689_p11 = scmp.lt.s32.totalorder %s523_s22, %s523_s22 }
  0x4a   :  { %106 = vadd.xlane.f32.xlu0 %v105_v19  ;;  %591 = vmatprep.subr.bf16.mxu0 %v717_v3  ;;  %v601_v19 = vpack.c.bf16 %v432_v18, %v431_v17  ;;  %p685_p10 = scmp.ne.s32.totalorder %s523_s22, %s684_s23  ;;  %p690_p12 = scmp.lt.s32.totalorder %s684_s23, %s684_s23 }
  0x4c   :  { %p691_p13 = por %p690_p12, %p689_p11 }
  0x4d   :  { %157 = vadd.xlane.f32.xlu1 %v156_v22  ;;  %593 = vmatpush3.bf16.msra.mxu0 %v592_v9  ;;  %v604_v22 = vpack.c.bf16 %v434_v21, %v433_v20 }
  0x4e   :  { %109 = vadd.xlane.f32.xlu0 %v108_v23  ;;  %594 = vmatprep.subr.bf16.mxu0 %v717_v3  ;;  %v435_v23 = vld [vmem:[#allocation6 + $0x70] sm:$0xff]  ;;  %p692_p0 = pnand %p691_p13, %p685_p10 }
  0x4f   :  { %v607_v25 = vpack.c.bf16 %v436_v24, %v435_v23 }
  0x51   :  { %160 = vadd.xlane.f32.xlu1 %v159_v26  ;;  %596 = vmatpush3.bf16.msra.mxu0 %v595_v12 }
  0x52   :  { %112 = vadd.xlane.f32.xlu0 %v111_v27  ;;  %597 = vmatprep.subr.bf16.mxu0 %v717_v3 }
  0x55   :  { %163 = vadd.xlane.f32.xlu1 %v162_v30  ;;  %599 = vmatpush3.bf16.msra.mxu0 %v598_v16 }
  0x56   :  { %115 = vadd.xlane.f32.xlu0 %v114_v31  ;;  %600 = vmatprep.subr.bf16.mxu0 %v717_v3 }
  0x59   :  { %166 = vadd.xlane.f32.xlu1 %v165_v34  ;;  %602 = vmatpush3.bf16.msra.mxu0 %v601_v19 }
  0x5a   :  { %118 = vadd.xlane.f32.xlu0 %v117_v35  ;;  %603 = vmatprep.subr.bf16.mxu0 %v717_v3 }
  0x5d   :  { %169 = vadd.xlane.f32.xlu1 %v168_v38  ;;  %605 = vmatpush3.bf16.msra.mxu0 %v604_v22 }
  0x5e   :  { %121 = vadd.xlane.f32.xlu0 %v120_v39  ;;  %606 = vmatprep.subr.bf16.mxu0 %v717_v3 }
  0x61   :  { %172 = vadd.xlane.f32.xlu1 %v171_v42  ;;  %608 = vmatpush3.bf16.msra.mxu0 %v607_v25  ;;  %v221_v42 = vlaneseq }
  0x62   :  { %124 = vadd.xlane.f32.xlu0 %v123_v43 }
  0x63   :  { %v222_v45 = vand.u32 127, %v221_v42 }
  0x65   :  { %175 = vadd.xlane.f32.xlu1 %v174_v46  ;;  %v224_v46 = vshrl.u32 %v221_v42, 7  ;;  %v234_v48 = vadd.s32 4294967280, %v222_v45  ;;  %v241_v49 = vadd.s32 4294967272, %v222_v45  ;;  %v248_v52 = vadd.s32 4294967264, %v222_v45 }
  0x66   :  { %127 = vadd.xlane.f32.xlu0 %v126_v47  ;;  %v227_v47 = vadd.s32 4294967288, %v222_v45  ;;  %v262_v57 = vadd.s32 4294967248, %v222_v45  ;;  %v276_v60 = vadd.s32 4294967232, %v222_v45  ;;  %v283_v61 = vadd.s32 4294967224, %v222_v45 }
  0x67   :  { %v225_v53 = vsub.s32 %v222_v45, %v224_v46  ;;  %v237_v56 = vsub.s32 %v234_v48, %v224_v46  ;;  %v297_v2 = vadd.s32 4294967208, %v222_v45  ;;  %v304_v4 = vadd.s32 4294967200, %v222_v45 }
  0x68   :  { %v311_v5 = vadd.s32 4294967192, %v222_v45  ;;  %v265_v6 = vsub.s32 %v262_v57, %v224_v46  ;;  %v860_v8 = vsub.s32 %v276_v60, %v224_v46  ;;  %v862_v9 = vsub.s32 %v283_v61, %v224_v46 }
  0x69   :  { %178 = vadd.xlane.f32.xlu1 %v177_v50  ;;  %v318_v12 = vadd.s32 4294967184, %v222_v45  ;;  %v325_v13 = vadd.s32 4294967176, %v222_v45  ;;  %v872_v17 = vsub.s32 %v297_v2, %v224_v46  ;;  %v876_v20 = vsub.s32 %v304_v4, %v224_v46 }
  0x6a   :  { %130 = vadd.xlane.f32.xlu0 %v129_v51  ;;  %v878_v21 = vsub.s32 %v311_v5, %v224_v46 }
  0x6b   :  { %v886_v42 = vsub.s32 %v318_v12, %v224_v46 }
  0x6d   :  { %181 = vadd.xlane.f32.xlu1 %v180_v54  ;;  %v255_v54 = vadd.s32 4294967256, %v222_v45 }
  0x6e   :  { %133 = vadd.xlane.f32.xlu0 %v132_v55  ;;  %v230_v55 = vsub.s32 %v227_v47, %v224_v46 }
  0x6f   :  { %v258_v3 = vsub.s32 %v255_v54, %v224_v46 }
  0x71   :  { %184 = vadd.xlane.f32.xlu1 %v183_v58  ;;  %v269_v58 = vadd.s32 4294967240, %v222_v45 }
  0x72   :  { %136 = vadd.xlane.f32.xlu0 %v135_v59  ;;  %v244_v59 = vsub.s32 %v241_v49, %v224_v46 }
  0x73   :  { %v272_v7 = vsub.s32 %v269_v58, %v224_v46 }
  0x75   :  { %187 = vadd.xlane.f32.xlu1 %v186_v0  ;;  %v251_v0 = vsub.s32 %v248_v52, %v224_v46 }
  0x76   :  { %139 = vadd.xlane.f32.xlu0 %v138_v1  ;;  %v290_v1 = vadd.s32 4294967216, %v222_v45  ;;  %v888_v45 = vsub.s32 %v325_v13, %v224_v46 }
  0x78   :  { %v870_v16 = vsub.s32 %v290_v1, %v224_v46 }
  0xc6   :  { %v816_v26 = vpop.xlane.xlu1 %142 }
  0xc7   :  { %v818_v27 = vpop.xlane.xlu0 %94  ;;  %v335_v22 = vrot.slane %v816_v26, %v225_v53 }
  0xc8   :  { %v226_v23 = vrot.slane %v818_v27, %v225_v53 }
  0xca   :  { %v820_v28 = vpop.xlane.xlu1 %145 }
  0xcb   :  { %v822_v29 = vpop.xlane.xlu0 %97  ;;  %v339_v14 = vrot.slane %v820_v28, %v230_v55 }
  0xcc   :  { %v231_v15 = vrot.slane %v822_v29, %v230_v55 }
  0xcd   :  { %v340_v26 = vsel %vm232_vm2, %v339_v14, %v335_v22 }
  0xce   :  { %v824_v30 = vpop.xlane.xlu1 %148  ;;  %v233_v27 = vsel %vm232_vm2, %v231_v15, %v226_v23  ;;  %vm514_vm2 = vcmask 58368  }
  0xcf   :  { %v826_v31 = vpop.xlane.xlu0 %100  ;;  %v344_v18 = vrot.slane %v824_v30, %v237_v56 }
  0xd0   :  { %v238_v19 = vrot.slane %v826_v31, %v237_v56 }
  0xd2   :  { %v828_v32 = vpop.xlane.xlu1 %151 }
  0xd3   :  { %v830_v33 = vpop.xlane.xlu0 %103  ;;  %v349_v24 = vrot.slane %v828_v32, %v244_v59 }
  0xd4   :  { %v245_v25 = vrot.slane %v830_v33, %v244_v59 }
  0xd6   :  { %v832_v34 = vpop.xlane.xlu1 %154 }
  0xd7   :  { %v834_v35 = vpop.xlane.xlu0 %106  ;;  %v354_v28 = vrot.slane %v832_v34, %v251_v0  ;;  %v345_v34 = vsel %vm239_vm3, %v344_v18, %v340_v26  ;;  %v532_v26 = vld [vmem:[#allocation8] ss:$0 sm:$0xff] }
  0xd8   :  { %v252_v29 = vrot.slane %v834_v35, %v251_v0  ;;  %v240_v35 = vsel %vm239_vm3, %v238_v19, %v233_v27  ;;  %v350_v46 = vsel %vm246_vm4, %v349_v24, %v345_v34  ;;  %v91_v24 = vld [vmem:[#allocation2] sm:$0x3] }
  0xd9   :  { %v247_v49 = vsel %vm246_vm4, %v245_v25, %v240_v35 }
  0xda   :  { %v836_v36 = vpop.xlane.xlu1 %157  ;;  %v254_v53 = vsel %vm253_vm5, %v252_v29, %v247_v49 }
  0xdb   :  { %v838_v37 = vpop.xlane.xlu0 %109  ;;  %v359_v32 = vrot.slane %v836_v36, %v258_v3 }
  0xdc   :  { %v259_v33 = vrot.slane %v838_v37, %v258_v3  ;;  %v355_v37 = vsel %vm253_vm5, %v354_v28, %v350_v46 }
  0xdd   :  { %v360_v56 = vsel %vm260_vm6, %v359_v32, %v355_v37 }
  0xde   :  { %v840_v38 = vpop.xlane.xlu1 %160  ;;  %v261_v57 = vsel %vm260_vm6, %v259_v33, %v254_v53 }
  0xdf   :  { %v842_v39 = vpop.xlane.xlu0 %112  ;;  %v364_v47 = vrot.slane %v840_v38, %v265_v6 }
  0xe0   :  { %v266_v48 = vrot.slane %v842_v39, %v265_v6 }
  0xe1   :  { %v365_v58 = vsel %vm267_vm7, %v364_v47, %v360_v56 }
  0xe2   :  { %v844_v40 = vpop.xlane.xlu1 %163  ;;  %v268_v59 = vsel %vm267_vm7, %v266_v48, %v261_v57 }
  0xe3   :  { %v846_v41 = vpop.xlane.xlu0 %115  ;;  %v369_v52 = vrot.slane %v844_v40, %v272_v7 }
  0xe4   :  { %v273_v36 = vrot.slane %v846_v41, %v272_v7 }
  0xe5   :  { %v370_v60 = vsel %vm274_vm8, %v369_v52, %v365_v58 }
  0xe6   :  { %v848_v43 = vpop.xlane.xlu1 %166  ;;  %v275_v61 = vsel %vm274_vm8, %v273_v36, %v268_v59 }
  0xe7   :  { %v850_v44 = vpop.xlane.xlu0 %118  ;;  %v374_v54 = vrot.slane %v848_v43, %v860_v8 }
  0xe8   :  { %v280_v38 = vrot.slane %v850_v44, %v860_v8 }
  0xe9   :  { %v375_v0 = vsel %vm281_vm9, %v374_v54, %v370_v60 }
  0xea   :  { %v852_v50 = vpop.xlane.xlu1 %169  ;;  %v282_v1 = vsel %vm281_vm9, %v280_v38, %v275_v61 }
  0xeb   :  { %v854_v51 = vpop.xlane.xlu0 %121  ;;  %v379_v40 = vrot.slane %v852_v50, %v862_v9 }
  0xec   :  { %v287_v41 = vrot.slane %v854_v51, %v862_v9 }
  0xed   :  { %v380_v4 = vsel %vm288_vm10, %v379_v40, %v375_v0 }
  0xee   :  { %v856_v62 = vpop.xlane.xlu1 %172  ;;  %v289_v5 = vsel %vm288_vm10, %v287_v41, %v282_v1 }
  0xef   :  { %v858_v63 = vpop.xlane.xlu0 %124  ;;  %v384_v43 = vrot.slane %v856_v62, %v870_v16 }
  0xf0   :  { %v294_v44 = vrot.slane %v858_v63, %v870_v16 }
  0xf1   :  { %v385_v8 = vsel %vm295_vm11, %v384_v43, %v380_v4 }
  0xf2   :  { %v864_v10 = vpop.xlane.xlu1 %175  ;;  %v296_v9 = vsel %vm295_vm11, %v294_v44, %v289_v5 }
  0xf3   :  { %v866_v11 = vpop.xlane.xlu0 %127  ;;  %v389_v50 = vrot.slane %v864_v10, %v872_v17 }
  0xf4   :  { %v301_v51 = vrot.slane %v866_v11, %v872_v17 }
  0xf5   :  { %v390_v12 = vsel %vm302_vm12, %v389_v50, %v385_v8 }
  0xf6   :  { %v179_v30 = vpop.xlane.xlu1 %178  ;;  %v303_v13 = vsel %vm302_vm12, %v301_v51, %v296_v9 }
  0xf7   :  { %v131_v31 = vpop.xlane.xlu0 %130  ;;  %v394_v2 = vrot.slane %v179_v30, %v876_v20 }
  0xf8   :  { %v308_v62 = vrot.slane %v131_v31, %v876_v20 }
  0xf9   :  { %v395_v14 = vsel %vm309_vm13, %v394_v2, %v390_v12 }
  0xfa   :  { %v182_v39 = vpop.xlane.xlu1 %181  ;;  %v310_v15 = vsel %vm309_vm13, %v308_v62, %v303_v13 }
  0xfb   :  { %v134_v55 = vpop.xlane.xlu0 %133  ;;  %v399_v6 = vrot.slane %v182_v39, %v878_v21 }
  0xfc   :  { %v315_v7 = vrot.slane %v134_v55, %v878_v21 }
  0xfd   :  { %v400_v18 = vsel %vm316_vm14, %v399_v6, %v395_v14 }
  0xfe   :  { %v185_v3 = vpop.xlane.xlu1 %184  ;;  %v317_v19 = vsel %vm316_vm14, %v315_v7, %v310_v15 }
  0xff   :  { %v137_v63 = vpop.xlane.xlu0 %136  ;;  %v404_v10 = vrot.slane %v185_v3, %v886_v42 }
 0x100   :  { %v322_v11 = vrot.slane %v137_v63, %v886_v42 }
 0x101   :  { %v405_v22 = vsel %vm323_vm15, %v404_v10, %v400_v18 }
 0x102   :  { %v188_v16 = vpop.xlane.xlu1 %187  ;;  %v324_v23 = vsel %vm323_vm15, %v322_v11, %v317_v19 }
 0x103   :  { %v140_v17 = vpop.xlane.xlu0 %139  ;;  %v409_v20 = vrot.slane %v188_v16, %v888_v45 }
 0x104   :  { %v329_v21 = vrot.slane %v140_v17, %v888_v45 }
 0x105   :  { %v410_v25 = vsel %vm330_vm0, %v409_v20, %v405_v22 }
 0x106   :  { %v331_v28 = vsel %vm330_vm0, %v329_v21, %v324_v23 }
 0x107   :  { %v412_v29 = vsel %vm411_vm1, %v410_v25, %v331_v28 }
 0x108   :  { %v414_v30 = vadd.f32 %v412_v29, %v91_v24 }
 0x10a   :  { %415 = vst [vmem:[#allocation2] sm:$0x3] %v414_v30 }
 0x111   :  { %v419_v31 = vld [vmem:[#allocation2] sm:$0x3] }
 0x112   :  { %v420_v42 = vmul.f32 0.015625, %v419_v31 }
 0x114   :  { %583 = vmatmul.mubr.f32.vlgmr.msra.gmra.mrb[0].mxu0 %v420_v42 }
 0x1e7   :  { %v510_v27 = vpop.f32.mrb[0].mxu0 }
 0x1e8   :  { %v511_v32 = vadd.f32 %v532_v26, %v510_v27  ;;  %v584_v33 = vpop.f32.mrb[1].mxu0 }
 0x1ea   :  { %515 = vst.msk [vmem:[#allocation9] sm:$0x3] %vm514_vm2, %v511_v32 }
 0x1eb   :  { %695 = shalt.err (!%p692_p0)
}
 0x1ec   :  { %s696_s26 = scalar_lea.hbm %s961_s3, 32 }
 0x1ed   :  { %p697_p1 = scmp.ne.s32.totalorder %s961_s3, %s696_s26  ;;  %p700_p2 = scmp.lt.u32.totalorder %s696_s26, %s961_s3 }
 0x1ef   :  { %p702_p3 = pnand %p700_p2, %p697_p1 }
 0x1f1   :  { %705 = shalt.err (!%p702_p3)
}
 0x1f2   :  { %525 = dma.vmem_to_hbm [thread:$0]  %s523_s22, 32, %s961_s3, [#allocation5]  }
 0x1f3   :  { %710 = dma.done.wait [#allocation5], 32  }
 0x1f4   :  { %711 = vsyncadd [#allocation5], 4294967264 }
 0x1f5   :  { %529 = vsyncpa [#allocation4], 1 }
 0x1f6   :  { %530 = vsyncpa [#allocation7], 1 }
 0x1f7   :  { %531 = vsyncpa [#allocation5], 1 }

</bundles_post_ra>
